<compile_context>
chip_gen: v7x
topology: tpu7x:2x2x1
jax: 0.10.0
libtpu: 0.0.40
codegen_flags: <defaults>
</compile_context>

<pallas_src>
import re

import jax
import jax.numpy as jnp
from jax.experimental import pallas as pl
from jax.experimental.pallas import tpu as pltpu

_LANE_CHOICES = (1024, 512, 256, 128)   # lane-dense widths (multiples of 128)


def _h_swish_kernel(x_ref, o_ref):
    x = x_ref[...]
    xf = x.astype(jnp.float32)          # no-op for f32; better accuracy for bf16
    # h_sigmoid(x) = ReLU6(x + 3) / 6 = clip(x + 3, 0, 6) * (1/6)
    hs = jnp.clip(xf + 3.0, 0.0, 6.0) * (1.0 / 6.0)
    o_ref[...] = (xf * hs).astype(o_ref.dtype)


def _h_swish_jnp(x):
    xf = x.astype(jnp.float32)
    return (xf * (jnp.clip(xf + 3.0, 0.0, 6.0) * (1.0 / 6.0))).astype(x.dtype)


def _tpu_generation() -> int:
    """Best-effort TPU generation (5, 6, 7, ...); 0 if unknown."""
    try:
        kind = jax.devices()[0].device_kind.lower()
    except Exception:
        return 0
    m = re.search(r"(\d+)", kind)
    return int(m.group(1)) if m else 0


def _pick_lanes(n: int) -> int:
    for lanes in _LANE_CHOICES:
        if n % lanes == 0:
            return lanes
    return 0


def _h_swish_2d(x2: jax.Array, *, donate_input: bool = False) -> jax.Array:
    """Tiled elementwise h_swish over a (rows, lanes) slab (lanes % 128 == 0)."""
    rows, lanes = x2.shape
    itemsize = jnp.dtype(x2.dtype).itemsize
    gen = _tpu_generation()

    # Target ~4 MiB blocks on v6e/v7x, ~2 MiB on v5e/unknown, so that
    # 2 specs x 2 pipeline buffers stays under the scoped-VMEM defaults
    # (16 MiB v5e, 32 MiB v6e/v7x) without touching vmem_limit_bytes.
    target_block_bytes = (4 << 20) if gen >= 6 else (2 << 20)
    tm = max(8, target_block_bytes // (lanes * itemsize))   # power of two, >= 8
    tm = min(tm, rows)                  # full-extent block when rows is small
    num_blocks = pl.cdiv(rows, tm)      # partial last block handled by Pallas

    # v7x has two TensorCores per chip: split the row range across them.
    core_parallel = getattr(pltpu, "CORE_PARALLEL", "parallel")
    semantics = (core_parallel,) if (gen >= 7 and num_blocks >= 2) else ("parallel",)

    total = rows * lanes
    cost = pl.CostEstimate(
        flops=5 * total,                       # add, clip (x2), 2x mul per element
        transcendentals=0,
        bytes_accessed=2 * total * itemsize,   # one read + one write: HBM-bound
    )

    return pl.pallas_call(
        _h_swish_kernel,
        out_shape=jax.ShapeDtypeStruct((rows, lanes), x2.dtype),
        grid=(num_blocks,),
        in_specs=[pl.BlockSpec((tm, lanes), lambda i: (i, 0))],
        out_specs=pl.BlockSpec((tm, lanes), lambda i: (i, 0)),
        compiler_params=pltpu.CompilerParams(dimension_semantics=semantics),
        cost_estimate=cost,
        input_output_aliases={0: 0} if donate_input else {},
    )(x2)


def h_swish(x: jax.Array, *, donate_input: bool = False) -> jax.Array:
    """Applies h_swish elementwise. Works on any shape (NCHW in MobileNetV3)."""
    orig_shape = x.shape
    total = x.size
    if total == 0:
        return x

    x_flat = x.reshape(-1)

    lanes = _pick_lanes(total)
    if lanes:
        # Common case: lanes divides the element count exactly, so the 2-D
        # view is a pure reinterpretation (no pad / no slice) and the kernel
        # is the only HBM traffic for this op.
        y2 = _h_swish_2d(x_flat.reshape(total // lanes, lanes),
                         donate_input=donate_input)
        return y2.reshape(orig_shape)

    # Ragged case (total % 128 != 0, e.g. small 7x7 feature maps with few
    # channels): run the kernel on the 128-aligned prefix and finish the
    # <128-element tail with plain jnp (negligible work, no full-array pad).
    main = (total // 128) * 128
    if main == 0:
        # Tiny tensor: grid-step overhead would dominate; compute directly.
        return _h_swish_jnp(x_flat).reshape(orig_shape)

    lanes = _pick_lanes(main)
    y_main = _h_swish_2d(x_flat[:main].reshape(main // lanes, lanes)).reshape(-1)
    y_tail = _h_swish_jnp(x_flat[main:])
    return jnp.concatenate([y_main, y_tail]).reshape(orig_shape)


def h_swish_ref(x: jax.Array) -> jax.Array:
    return x * (jnp.clip(x + 3.0, 0.0, 6.0) / 6.0)


if __name__ == "__main__":
    key = jax.random.PRNGKey(0)
    # Small NCHW input consistent with h_swish's usage inside MobileNetV3.
    x = jax.random.normal(key, (2, 4, 16, 16), dtype=jnp.float32) * 4.0

    y = h_swish(x)
    jax.block_until_ready(y)

    y_ref = h_swish_ref(x)
    assert y.shape == x.shape and y.dtype == x.dtype
    assert jnp.allclose(y, y_ref, atol=1e-6, rtol=1e-6), "mismatch vs reference"

    # Ragged flattened size (2*4*7*7 = 392, not a multiple of 128): exercises
    # the aligned-prefix + jnp-tail path (no pad / slice of the full tensor).
    x2 = jax.random.normal(jax.random.PRNGKey(1), (2, 4, 7, 7), dtype=jnp.float32) * 4.0
    y2 = h_swish(x2)
    jax.block_until_ready(y2)
    assert y2.shape == x2.shape and y2.dtype == x2.dtype
    assert jnp.allclose(y2, h_swish_ref(x2), atol=1e-6, rtol=1e-6), "mismatch (ragged path)"

    # bf16 input: kernel computes in f32 internally and casts back on store.
    xb = (jax.random.normal(jax.random.PRNGKey(2), (2, 8, 16, 16), dtype=jnp.float32) * 4.0
          ).astype(jnp.bfloat16)
    yb = h_swish(xb)
    jax.block_until_ready(yb)
    assert yb.shape == xb.shape and yb.dtype == xb.dtype
    assert jnp.allclose(yb.astype(jnp.float32),
                        h_swish_ref(xb.astype(jnp.float32)),
                        atol=1e-1, rtol=1e-2), "mismatch (bf16 path)"

    print("KERNEL_OK")
</pallas_src>

<mosaic_0001>
module attributes {stable_mosaic.version = 11 : i64} {
  func.func @_h_swish_kernel(%arg0: i32, %arg1: memref<2x1024xf32, #tpu.memory_space<vmem>>, %arg2: memref<2x1024xf32, #tpu.memory_space<vmem>>) attributes {dimension_semantics = [#tpu.dimension_semantics<parallel>], iteration_bounds = array<i64: 1>, scalar_prefetch = 0 : i64, scratch_operands = 0 : i64, tpu.core_type = #tpu.core_type<tc>, window_params = [{transform_indices = @transform_0, window_bounds = array<i64: 2, 1024>}, {transform_indices = @transform_1, window_bounds = array<i64: 2, 1024>}]} {
    %c0 = arith.constant 0 : index
    %c0_0 = arith.constant 0 : index
    %0 = vector.load %arg1[%c0, %c0_0] : memref<2x1024xf32, #tpu.memory_space<vmem>>, vector<2x1024xf32>
    %cst = arith.constant 3.000000e+00 : f32
    %1 = vector.broadcast %cst : f32 to vector<2x1024xf32>
    %2 = arith.addf %0, %1 : vector<2x1024xf32>
    %cst_1 = arith.constant 0.000000e+00 : f32
    %cst_2 = arith.constant 6.000000e+00 : f32
    %3 = vector.broadcast %cst_1 : f32 to vector<2x1024xf32>
    %4 = arith.maximumf %3, %2 : vector<2x1024xf32>
    %5 = vector.broadcast %cst_2 : f32 to vector<2x1024xf32>
    %6 = arith.minimumf %5, %4 : vector<2x1024xf32>
    %cst_3 = arith.constant 0.166666672 : f32
    %7 = vector.broadcast %cst_3 : f32 to vector<2x1024xf32>
    %8 = arith.mulf %6, %7 : vector<2x1024xf32>
    %9 = arith.mulf %0, %8 : vector<2x1024xf32>
    %c0_4 = arith.constant 0 : index
    %c0_5 = arith.constant 0 : index
    %10 = vector.load %arg2[%c0_4, %c0_5] : memref<2x1024xf32, #tpu.memory_space<vmem>>, vector<2x1024xf32>
    tpu.vector_store %arg2[%c0_4, %c0_5], %9 {strides = array<i32>} : memref<2x1024xf32, #tpu.memory_space<vmem>>, vector<2x1024xf32>,
    return
  }
  func.func @transform_0(%arg0: i32) -> (i32, i32) {
    %c0_i32 = arith.constant 0 : i32
    %c0_i32_0 = arith.constant 0 : i32
    return %arg0, %c0_i32 : i32, i32
  }
  func.func @transform_1(%arg0: i32) -> (i32, i32) {
    %c0_i32 = arith.constant 0 : i32
    %c0_i32_0 = arith.constant 0 : i32
    return %arg0, %c0_i32 : i32, i32
  }
}

</mosaic_0001>

<bundles_post_ra>
// kernel: tpu_custom_call.1
= control target key start
LH: loop header
LB: loop body
LE: loop exit
PB: predicated region body
PF: predicated region fallthrough
CT: control target
= control target key end

     0   :  { %6 = vsyncpa [#allocation3], 0  ;;  %s136_s0 = inlined_call_operand.hbm [shape: f32[2,1024], index: 0, kind: input, shape index: {}]   ;;  %s137_s1 = inlined_call_operand.hbm [shape: f32[2,1024], index: 1, kind: output, shape index: {}]  }
   0x1   :  { %7 = vsyncpa [#allocation4], 0  ;;  %s100_s6 = smov [#allocation2]   ;;  %s52_s10 = scalar_lea.hbm %s136_s0, 256 }
   0x2   :  { %s14_s7 = sshll.u32 %s100_s6, 4  ;;  %p53_p0 = scmp.ne.s32.totalorder %s136_s0, %s52_s10  ;;  %s15_s7 = int_to_ptr.vmem [resolvable:$true] %s14_s7 }
   0x3   :  { %p56_p1 = scmp.lt.u32.totalorder %s52_s10, %s136_s0 }
   0x5   :  { %p58_p2 = pnand %p56_p1, %p53_p0 }
   0x7   :  { %61 = shalt.err (!%p58_p2)
}
   0x8   :  { %s62_s15 = scalar_lea.vmem %s15_s7, 256  ;;  %p67_p4 = scmp.lt.s32.totalorder %s15_s7, %s15_s7 }
   0x9   :  { %p63_p3 = scmp.ne.s32.totalorder %s15_s7, %s62_s15  ;;  %p68_p5 = scmp.lt.s32.totalorder %s62_s15, %s62_s15 }
   0xb   :  { %p69_p6 = por %p68_p5, %p67_p4 }
   0xd   :  { %p70_p7 = pnand %p69_p6, %p63_p3 }
   0xf   :  { %73 = shalt.err (!%p70_p7)
}
  0x10   :  { %17 = dma.hbm_to_vmem [thread:$0]  %s136_s0, 256, %s15_s7, [#allocation3]  }
  0x11   :  { %96 = dma.done.wait [#allocation3], 256  }
  0x12   :  { %97 = vsyncadd [#allocation3], 4294967040  ;;  %v21_v0 = vld [vmem:[#allocation2] sm:$0xff]  ;;  %v22_v1 = vld [vmem:[#allocation2 + $0x8] sm:$0xff]  ;;  %s101_s18 = smov [#allocation5]  }
  0x13   :  { %v23_v2 = vadd.f32 3.0, %v21_v0  ;;  %v24_v3 = vadd.f32 3.0, %v22_v1  ;;  %s41_s19 = sshll.u32 %s101_s18, 4  ;;  %s42_s19 = int_to_ptr.vmem [resolvable:$true] %s41_s19 }
  0x14   :  { %s74_s0 = scalar_lea.vmem %s42_s19, 256  ;;  %p79_p9 = scmp.lt.s32.totalorder %s42_s19, %s42_s19 }
  0x15   :  { %v25_v4 = vmax.f32 %v23_v2, 0.0  ;;  %v26_v5 = vmax.f32 %v24_v3, 0.0  ;;  %p75_p8 = scmp.ne.s32.totalorder %s42_s19, %s74_s0  ;;  %p80_p10 = scmp.lt.s32.totalorder %s74_s0, %s74_s0 }
  0x17   :  { %v27_v6 = vmin.f32 %v25_v4, 6.0  ;;  %v28_v7 = vmin.f32 %v26_v5, 6.0  ;;  %p81_p11 = por %p80_p10, %p79_p9 }
  0x19   :  { %v29_v8 = vmul.f32 0.16666667, %v27_v6  ;;  %v30_v9 = vmul.f32 0.16666667, %v28_v7  ;;  %p82_p12 = pnand %p81_p11, %p75_p8 }
  0x1b   :  { %v31_v10 = vmul.f32 %v29_v8, %v21_v0  ;;  %v32_v11 = vmul.f32 %v30_v9, %v22_v1 }
  0x1d   :  { %33 = vst [vmem:[#allocation5] sm:$0xff] %v31_v10  ;;  %34 = vst [vmem:[#allocation5 + $0x8] sm:$0xff] %v32_v11 }
  0x1e   :  { %85 = shalt.err (!%p82_p12)
}
  0x1f   :  { %s86_s22 = scalar_lea.hbm %s137_s1, 256 }
  0x20   :  { %p87_p13 = scmp.ne.s32.totalorder %s137_s1, %s86_s22  ;;  %p90_p0 = scmp.lt.u32.totalorder %s86_s22, %s137_s1 }
  0x22   :  { %p92_p1 = pnand %p90_p0, %p87_p13 }
  0x24   :  { %95 = shalt.err (!%p92_p1)
}
  0x25   :  { %44 = dma.vmem_to_hbm [thread:$0]  %s42_s19, 256, %s137_s1, [#allocation4]  }
  0x26   :  { %98 = dma.done.wait [#allocation4], 256  }
  0x27   :  { %99 = vsyncadd [#allocation4], 4294967040 }
  0x28   :  { %48 = vsyncpa [#allocation3], 1 }
  0x29   :  { %49 = vsyncpa [#allocation4], 1 }

</bundles_post_ra>
